<compile_context>
chip_gen: v7x
topology: tpu7x:2x2x1
jax: 0.10.0
libtpu: 0.0.40
codegen_flags: <defaults>
</compile_context>

<pallas_src>
import math

import jax
import jax.numpy as jnp
from jax.experimental import pallas as pl
from jax.experimental.pallas import tpu as pltpu

LANES = 128           # lane width (last dim of every vreg)
MAX_TILE_ROWS = 2048  # 2048 * 128 * 2B = 512 KiB bf16 per output block


def _make_arange_kernel(tile_rows):
    tile_elems = tile_rows * LANES

    def kernel(start_ref, o_ref):
        # start_ref: SMEM f32 scalar; o_ref: (tile_rows, 128) bf16 block in VMEM.
        base = pl.program_id(0) * tile_elems                       # scalar (int32) bookkeeping
        row = jax.lax.broadcasted_iota(jnp.int32, (tile_rows, LANES), 0)
        col = jax.lax.broadcasted_iota(jnp.int32, (tile_rows, LANES), 1)
        idx = base + row * LANES + col                              # exact int32 indices
        start = start_ref[0]                                        # hoisted scalar read
        o_ref[...] = (start + idx.astype(jnp.float32)).astype(jnp.bfloat16)

    return kernel


def arange_start(start, end):
    """Pallas equivalent of torch.arange(start, end, dtype=torch.bfloat16).

    `start` and `end` are treated as static (trace-time) scalars: Pallas/JAX
    need a static output length, and using `start` both for the length and as
    a runtime value would risk silent mismatches.
    """
    # TODO(synk): torch.arange supports a fully dynamic output length; Pallas
    # (like jnp) requires a static shape, so start/end are trace-time constants.
    n = int(math.ceil(float(end) - float(start)))
    assert n > 0, "arange(start, end) must be non-empty for this kernel"

    # Sublane-dense tiling: pad rows to a multiple of 16 (bf16 sublane packing),
    # then tile the row axis with blocks of at most MAX_TILE_ROWS rows.
    rows_needed = -(-n // LANES)
    rows_padded = -(-rows_needed // 16) * 16
    tile_rows = min(rows_padded, MAX_TILE_ROWS)
    num_tiles = -(-rows_padded // tile_rows)
    total_rows = num_tiles * tile_rows

    start_arr = jnp.asarray([start], dtype=jnp.float32)

    out = pl.pallas_call(
        _make_arange_kernel(tile_rows),
        out_shape=jax.ShapeDtypeStruct((total_rows, LANES), jnp.bfloat16),
        grid=(num_tiles,),
        in_specs=[pl.BlockSpec(memory_space=pltpu.SMEM)],
        out_specs=pl.BlockSpec((tile_rows, LANES), lambda i: (i, 0)),
        compiler_params=pltpu.CompilerParams(
            dimension_semantics=("parallel",)),
    )(start_arr)

    return out.reshape(-1)[:n]


if __name__ == "__main__":
    key = jax.random.PRNGKey(0)  # unused (module has no weights), kept for convention

    # Small deterministic example: arange(2, 66) -> 64 bf16 elements.
    start, end = 2, 66
    result = jax.block_until_ready(arange_start(start, end))
    expected = jnp.arange(start, end, dtype=jnp.float32).astype(jnp.bfloat16)
    assert result.dtype == jnp.bfloat16
    assert result.shape == expected.shape
    assert bool(jnp.all(result == expected))

    # A larger, non-multiple-of-128 range to exercise the grid + padding path.
    start2, end2 = 0, 5000
    result2 = jax.block_until_ready(arange_start(start2, end2))
    expected2 = jnp.arange(start2, end2, dtype=jnp.float32).astype(jnp.bfloat16)
    assert result2.shape == expected2.shape
    assert bool(jnp.all(result2 == expected2))

    print("KERNEL_OK")
</pallas_src>

<mosaic_0001>
module attributes {stable_mosaic.version = 11 : i64} {
  func.func @kernel(%arg0: i32, %arg1: memref<1xf32, #tpu.memory_space<smem>>, %arg2: memref<16x128xbf16, #tpu.memory_space<vmem>>) attributes {dimension_semantics = [#tpu.dimension_semantics<parallel>], iteration_bounds = array<i64: 1>, scalar_prefetch = 0 : i64, scratch_operands = 0 : i64, tpu.core_type = #tpu.core_type<tc>, window_params = [{transform_indices = @transform_0, window_bounds = array<i64: 1>}, {transform_indices = @transform_1, window_bounds = array<i64: 16, 128>}]} {
    %c2048_i32 = arith.constant 2048 : i32
    %0 = arith.muli %arg0, %c2048_i32 : i32
    %1 = tpu.iota {dimensions = array<i32: 0>} : vector<16x128xi32>
    %2 = tpu.iota {dimensions = array<i32: 1>} : vector<16x128xi32>
    %c128_i32 = arith.constant 128 : i32
    %3 = vector.broadcast %c128_i32 : i32 to vector<16x128xi32>
    %4 = arith.muli %1, %3 : vector<16x128xi32>
    %5 = vector.broadcast %0 : i32 to vector<16x128xi32>
    %6 = arith.addi %5, %4 : vector<16x128xi32>
    %7 = arith.addi %6, %2 : vector<16x128xi32>
    %c0 = arith.constant 0 : index
    %8 = memref.load %arg1[%c0] : memref<1xf32, #tpu.memory_space<smem>>
    %9 = arith.sitofp %7 : vector<16x128xi32> to vector<16x128xf32>
    %10 = vector.broadcast %8 : f32 to vector<16x128xf32>
    %11 = arith.addf %10, %9 : vector<16x128xf32>
    %12 = arith.truncf %11 : vector<16x128xf32> to vector<16x128xbf16>
    %c0_0 = arith.constant 0 : index
    %c0_1 = arith.constant 0 : index
    %13 = vector.load %arg2[%c0_0, %c0_1] : memref<16x128xbf16, #tpu.memory_space<vmem>>, vector<16x128xbf16>
    tpu.vector_store %arg2[%c0_0, %c0_1], %12 {strides = array<i32>} : memref<16x128xbf16, #tpu.memory_space<vmem>>, vector<16x128xbf16>,
    return
  }
  func.func @transform_0(%arg0: i32) -> i32 {
    %c0_i32 = arith.constant 0 : i32
    %c0_i32_0 = arith.constant 0 : i32
    return %c0_i32 : i32
  }
  func.func @transform_1(%arg0: i32) -> (i32, i32) {
    %c0_i32 = arith.constant 0 : i32
    %c0_i32_0 = arith.constant 0 : i32
    return %arg0, %c0_i32 : i32, i32
  }
}

</mosaic_0001>

<bundles_post_ra>
// kernel: tpu_custom_call.1
= control target key start
LH: loop header
LB: loop body
LE: loop exit
PB: predicated region body
PF: predicated region fallthrough
CT: control target
= control target key end

     0   :  { %v11_v0 = vlaneseq  ;;  %s119_s0 = inlined_call_operand.<no memory space> [shape: f32[1], index: 0, kind: input, shape index: {}]   ;;  %s120_s1 = inlined_call_operand.hbm [shape: bf16[16,128], index: 1, kind: output, shape index: {}]  }
   0x1   :  { %7 = vsyncpa [#allocation4], 0  ;;  %v26_v7 = vstv %s119_s0  ;;  %s91_s8 = smov [#allocation3]  }
   0x2   :  { %v12_v1 = vshrl.u32 %v11_v0, 7  ;;  %v15_v2 = vand.u32 127, %v11_v0  ;;  %s44_s9 = sshll.u32 %s91_s8, 4  ;;  %s45_s9 = int_to_ptr.vmem [resolvable:$true] %s44_s9 }
   0x3   :  { %s67_s10 = scalar_lea.vmem %s45_s9, 128  ;;  %p72_p1 = scmp.lt.s32.totalorder %s45_s9, %s45_s9 }
   0x4   :  { %v13_v3 = vadd.s32 8, %v12_v1  ;;  %v16_v4 = vmul.u32 128, %v12_v1  ;;  %p68_p0 = scmp.ne.s32.totalorder %s45_s9, %s67_s10  ;;  %p73_p2 = scmp.lt.s32.totalorder %s67_s10, %s67_s10 }
   0x6   :  { %v17_v5 = vmul.u32 128, %v13_v3  ;;  %v21_v6 = vadd.s32 %v16_v4, %v15_v2  ;;  %p74_p3 = por %p73_p2, %p72_p1 }
   0x8   :  { %v22_v8 = vadd.s32 %v17_v5, %v15_v2  ;;  %v24_v9 = vcvt.s32.f32 %v21_v6  ;;  %p75_p4 = pnand %p74_p3, %p68_p0 }
   0xa   :  { %v25_v10 = vcvt.s32.f32 %v22_v8  ;;  %v27_v11 = vadd.f32 %v26_v7, %v24_v9 }
   0xc   :  { %v28_v12 = vadd.f32 %v26_v7, %v25_v10 }
   0xe   :  { %v62_v13 = vpack.c.bf16 %v28_v12, %v27_v11 }
  0x10   :  { %63 = vst [vmem:[#allocation3] sm:$0xff] %v62_v13  }
  0x11   :  { %78 = shalt.err (!%p75_p4)
}
  0x12   :  { %s79_s0 = scalar_lea.hbm %s120_s1, 128 }
  0x13   :  { %p80_p5 = scmp.ne.s32.totalorder %s120_s1, %s79_s0  ;;  %p83_p6 = scmp.lt.u32.totalorder %s79_s0, %s120_s1 }
  0x15   :  { %p85_p7 = pnand %p83_p6, %p80_p5 }
  0x17   :  { %88 = shalt.err (!%p85_p7)
}
  0x18   :  { %s92_s17 = smov 64   ;;  %s93_s18 = smov 4  }
  0x19   :  { %50 = dma.vmem_to_hbm [thread:$0]  %s45_s9, 128, %s120_s1, [#allocation4], %s92_s17, %s92_s17, %s93_s18  }
  0x1a   :  { %89 = dma.done.wait [#allocation4], 128  }
  0x1b   :  { %90 = vsyncadd [#allocation4], 4294967168 }
  0x1c   :  { %54 = vsyncpa [#allocation4], 1 }

</bundles_post_ra>
